<compile_context>
chip_gen: v7x
topology: tpu7x:2x2x1
jax: 0.10.0
libtpu: 0.0.40
codegen_flags: <defaults>
</compile_context>

<pallas_src>
import math

import jax
import jax.numpy as jnp
from jax.experimental import pallas as pl
from jax.experimental.pallas import tpu as pltpu

LANE = 128
SUBLANE = 8
H1 = 128
H2 = 256
NEG_BIG = -1e30  # drives padded logits to exactly-zero softmax probability


def _round_up(x, m):
    return (x + m - 1) // m * m


def actor_kernel(x_ref, w1_ref, b1_ref, w2_ref, b2_ref, w3_ref, b3_ref, probs_ref):
    # one bf16 cast for the whole input tile (MXU-native dtype, f32 accumulation)
    x = x_ref[...].astype(jnp.bfloat16)

    # linear1 + ReLU  (K padded to 128; padded rows of w1 are zero)
    h1 = jnp.dot(x, w1_ref[...], preferred_element_type=jnp.float32) + b1_ref[...]
    h1 = jnp.maximum(h1, 0.0)

    # linear2 + ReLU
    h2 = jnp.dot(h1.astype(jnp.bfloat16), w2_ref[...],
                 preferred_element_type=jnp.float32) + b2_ref[...]
    h2 = jnp.maximum(h2, 0.0)

    # linear3  (N padded to 128; padded cols of w3 are zero, padded bias = -1e30)
    logits = jnp.dot(h2.astype(jnp.bfloat16), w3_ref[...],
                     preferred_element_type=jnp.float32) + b3_ref[...]

    # numerically stable softmax over the lane-dense (padded) last axis;
    # padded lanes contribute exp(-huge) == 0, so valid probs match the torch ref.
    # Exact f32 divide (not approx reciprocal) so every row sums to 1 within
    # f32 rounding.
    m = jnp.max(logits, axis=-1, keepdims=True)
    e = jnp.exp(logits - m)
    denom = jnp.sum(e, axis=-1, keepdims=True)
    probs_ref[...] = (e / denom).astype(probs_ref.dtype)


def actor_forward(state, params, action_size, *, tile_b=256):
    """state: (B, state_size) f32 -> probs: (B, action_size) f32."""
    w1, b1, w2, b2, w3, b3 = params  # already padded; weights bf16, biases f32
    B, S = state.shape
    K_pad = w1.shape[0]
    N_pad = w3.shape[1]

    # batch tile: at least 8 sublanes, at most tile_b rows; pad batch to a multiple
    tb = min(tile_b, _round_up(max(B, 1), SUBLANE))
    B_pad = _round_up(max(B, 1), tb)

    x = jnp.zeros((B_pad, K_pad), jnp.float32)
    x = x.at[:B, :S].set(state.astype(jnp.float32))

    grid = (B_pad // tb,)

    def const(shape):
        # weights/biases: constant block index -> DMA'd once, VMEM-resident
        return pl.BlockSpec(shape, lambda i: (0,) * len(shape))

    probs_padded = pl.pallas_call(
        actor_kernel,
        out_shape=jax.ShapeDtypeStruct((B_pad, N_pad), jnp.float32),
        grid=grid,
        in_specs=[
            pl.BlockSpec((tb, K_pad), lambda i: (i, 0)),  # only the batch tile advances
            const(w1.shape), const(b1.shape),
            const(w2.shape), const(b2.shape),
            const(w3.shape), const(b3.shape),
        ],
        out_specs=pl.BlockSpec((tb, N_pad), lambda i: (i, 0)),  # lane-dense store
        compiler_params=pltpu.CompilerParams(
            dimension_semantics=("parallel",)),  # megacore sharding
    )(x, w1, b1, w2, b2, w3, b3)

    return probs_padded[:B, :action_size]


def actor_reference(state, params, action_size):
    """Pure-JAX reference replicating the kernel's numerics (bf16 matmuls,
    f32 accumulation) for a correctness check."""
    w1, b1, w2, b2, w3, b3 = params
    B, S = state.shape
    K_pad = w1.shape[0]
    x = jnp.zeros((B, K_pad), jnp.float32).at[:, :S].set(state).astype(jnp.bfloat16)
    h1 = jnp.maximum(jnp.dot(x, w1, preferred_element_type=jnp.float32) + b1, 0.0)
    h2 = jnp.maximum(
        jnp.dot(h1.astype(jnp.bfloat16), w2, preferred_element_type=jnp.float32) + b2, 0.0)
    logits = jnp.dot(h2.astype(jnp.bfloat16), w3,
                     preferred_element_type=jnp.float32) + b3
    m = jnp.max(logits, axis=-1, keepdims=True)
    e = jnp.exp(logits - m)
    probs = e / jnp.sum(e, axis=-1, keepdims=True)
    return probs[:, :action_size]


def init_actor_params(key, state_size, action_size):
    """nn.Linear default init U(-1/sqrt(fan_in), +1/sqrt(fan_in)), then pad to
    lane-friendly shapes and cast weights to bf16 (accumulation stays f32)."""

    def linear(key, fan_in, fan_out):
        kw, kb = jax.random.split(key)
        bound = 1.0 / math.sqrt(fan_in)
        w = jax.random.uniform(kw, (fan_in, fan_out), jnp.float32, -bound, bound)
        b = jax.random.uniform(kb, (1, fan_out), jnp.float32, -bound, bound)
        return w, b

    k1, k2, k3 = jax.random.split(key, 3)
    w1, b1 = linear(k1, state_size, H1)
    w2, b2 = linear(k2, H1, H2)
    w3, b3 = linear(k3, H2, action_size)

    K_pad = _round_up(max(state_size, 1), LANE)
    N_pad = _round_up(max(action_size, 1), LANE)

    # pad input-feature dim with zero rows (padded input lanes are zero anyway)
    w1_p = jnp.zeros((K_pad, H1), jnp.float32).at[:state_size, :].set(w1)
    # pad action dim with zero weight cols and a huge negative bias so softmax
    # gives the padded lanes exactly zero probability
    w3_p = jnp.zeros((H2, N_pad), jnp.float32).at[:, :action_size].set(w3)
    b3_p = jnp.full((1, N_pad), NEG_BIG, jnp.float32).at[:, :action_size].set(b3)

    return (w1_p.astype(jnp.bfloat16), b1,
            w2.astype(jnp.bfloat16), b2,
            w3_p.astype(jnp.bfloat16), b3_p)


if __name__ == "__main__":
    # PaperTennisEnv: small discrete observation tuple / discrete action space.
    state_size = 4
    action_size = 8
    batch = 2

    key = jax.random.PRNGKey(0)
    k_params, k_state = jax.random.split(key)

    params = init_actor_params(k_params, state_size, action_size)
    state = jax.random.normal(k_state, (batch, state_size), dtype=jnp.float32)

    probs = actor_forward(state, params, action_size)
    probs = jax.block_until_ready(probs)

    # sanity: valid categorical probabilities
    assert probs.shape == (batch, action_size)
    assert bool(jnp.all(probs >= 0.0))
    assert bool(jnp.allclose(jnp.sum(probs, axis=-1), 1.0, atol=1e-4))

    # correctness vs. a pure-JAX reference with identical numerics
    ref = actor_reference(state, params, action_size)
    assert bool(jnp.allclose(probs, ref, atol=1e-3, rtol=1e-2))

    print("KERNEL_OK")
</pallas_src>

<mosaic_0001>
module attributes {stable_mosaic.version = 11 : i64} {
  func.func @actor_kernel(%arg0: i32, %arg1: memref<8x128xf32, #tpu.memory_space<vmem>>, %arg2: memref<128x128xbf16, #tpu.memory_space<vmem>>, %arg3: memref<1x128xf32, #tpu.memory_space<vmem>>, %arg4: memref<128x256xbf16, #tpu.memory_space<vmem>>, %arg5: memref<1x256xf32, #tpu.memory_space<vmem>>, %arg6: memref<256x128xbf16, #tpu.memory_space<vmem>>, %arg7: memref<1x128xf32, #tpu.memory_space<vmem>>, %arg8: memref<8x128xf32, #tpu.memory_space<vmem>>) attributes {dimension_semantics = [#tpu.dimension_semantics<parallel>], iteration_bounds = array<i64: 1>, scalar_prefetch = 0 : i64, scratch_operands = 0 : i64, tpu.core_type = #tpu.core_type<tc>, window_params = [{transform_indices = @transform_0, window_bounds = array<i64: 8, 128>}, {pipeline_mode = #tpu.pipeline_mode<synchronous>, transform_indices = @transform_1, window_bounds = array<i64: 128, 128>}, {pipeline_mode = #tpu.pipeline_mode<synchronous>, transform_indices = @transform_2, window_bounds = array<i64: 1, 128>}, {pipeline_mode = #tpu.pipeline_mode<synchronous>, transform_indices = @transform_3, window_bounds = array<i64: 128, 256>}, {pipeline_mode = #tpu.pipeline_mode<synchronous>, transform_indices = @transform_4, window_bounds = array<i64: 1, 256>}, {pipeline_mode = #tpu.pipeline_mode<synchronous>, transform_indices = @transform_5, window_bounds = array<i64: 256, 128>}, {pipeline_mode = #tpu.pipeline_mode<synchronous>, transform_indices = @transform_6, window_bounds = array<i64: 1, 128>}, {transform_indices = @transform_7, window_bounds = array<i64: 8, 128>}]} {
    %c0 = arith.constant 0 : index
    %c0_0 = arith.constant 0 : index
    %0 = vector.load %arg1[%c0, %c0_0] : memref<8x128xf32, #tpu.memory_space<vmem>>, vector<8x128xf32>
    %1 = arith.truncf %0 : vector<8x128xf32> to vector<8x128xbf16>
    %c0_1 = arith.constant 0 : index
    %c0_2 = arith.constant 0 : index
    %2 = vector.load %arg2[%c0_1, %c0_2] : memref<128x128xbf16, #tpu.memory_space<vmem>>, vector<128x128xbf16>
    %cst = arith.constant dense<0.000000e+00> : vector<8x128xf32>
    %3 = tpu.matmul %1, %2, %cst {dimension_numbers = #tpu.dot_dimension_numbers<[1], [0], [0], [1], [0, 0, 1, 1], [], []>} : vector<8x128xbf16>, vector<128x128xbf16>, vector<8x128xf32> -> vector<8x128xf32>
    %c0_3 = arith.constant 0 : index
    %c0_4 = arith.constant 0 : index
    %4 = vector.load %arg3[%c0_3, %c0_4] : memref<1x128xf32, #tpu.memory_space<vmem>>, vector<1x128xf32>
    %5 = vector.broadcast %4 : vector<1x128xf32> to vector<8x128xf32>
    %6 = arith.addf %3, %5 : vector<8x128xf32>
    %cst_5 = arith.constant 0.000000e+00 : f32
    %7 = vector.broadcast %cst_5 : f32 to vector<8x128xf32>
    %8 = arith.maximumf %6, %7 : vector<8x128xf32>
    %9 = arith.truncf %8 : vector<8x128xf32> to vector<8x128xbf16>
    %c0_6 = arith.constant 0 : index
    %c0_7 = arith.constant 0 : index
    %10 = vector.load %arg4[%c0_6, %c0_7] : memref<128x256xbf16, #tpu.memory_space<vmem>>, vector<128x256xbf16>
    %cst_8 = arith.constant dense<0.000000e+00> : vector<8x256xf32>
    %11 = tpu.matmul %9, %10, %cst_8 {dimension_numbers = #tpu.dot_dimension_numbers<[1], [0], [0], [1], [0, 0, 1, 1], [], []>} : vector<8x128xbf16>, vector<128x256xbf16>, vector<8x256xf32> -> vector<8x256xf32>
    %c0_9 = arith.constant 0 : index
    %c0_10 = arith.constant 0 : index
    %12 = vector.load %arg5[%c0_9, %c0_10] : memref<1x256xf32, #tpu.memory_space<vmem>>, vector<1x256xf32>
    %13 = vector.broadcast %12 : vector<1x256xf32> to vector<8x256xf32>
    %14 = arith.addf %11, %13 : vector<8x256xf32>
    %cst_11 = arith.constant 0.000000e+00 : f32
    %15 = vector.broadcast %cst_11 : f32 to vector<8x256xf32>
    %16 = arith.maximumf %14, %15 : vector<8x256xf32>
    %17 = arith.truncf %16 : vector<8x256xf32> to vector<8x256xbf16>
    %c0_12 = arith.constant 0 : index
    %c0_13 = arith.constant 0 : index
    %18 = vector.load %arg6[%c0_12, %c0_13] : memref<256x128xbf16, #tpu.memory_space<vmem>>, vector<256x128xbf16>
    %cst_14 = arith.constant dense<0.000000e+00> : vector<8x128xf32>
    %19 = tpu.matmul %17, %18, %cst_14 {dimension_numbers = #tpu.dot_dimension_numbers<[1], [0], [0], [1], [0, 0, 1, 1], [], []>} : vector<8x256xbf16>, vector<256x128xbf16>, vector<8x128xf32> -> vector<8x128xf32>
    %c0_15 = arith.constant 0 : index
    %c0_16 = arith.constant 0 : index
    %20 = vector.load %arg7[%c0_15, %c0_16] : memref<1x128xf32, #tpu.memory_space<vmem>>, vector<1x128xf32>
    %21 = vector.broadcast %20 : vector<1x128xf32> to vector<8x128xf32>
    %22 = arith.addf %19, %21 : vector<8x128xf32>
    %cst_17 = arith.constant dense<0xFF800000> : vector<8xf32>
    %23 = vector.multi_reduction <maximumf>, %22, %cst_17 [1] : vector<8x128xf32> to vector<8xf32>
    %24 = vector.shape_cast %23 : vector<8xf32> to vector<8x1xf32>
    %25 = vector.broadcast %24 : vector<8x1xf32> to vector<8x128xf32>
    %26 = arith.subf %22, %25 : vector<8x128xf32>
    %27 = math.exp %26 : vector<8x128xf32>
    %cst_18 = arith.constant dense<0.000000e+00> : vector<8xf32>
    %28 = vector.multi_reduction <add>, %27, %cst_18 [1] : vector<8x128xf32> to vector<8xf32>
    %29 = vector.shape_cast %28 : vector<8xf32> to vector<8x1xf32>
    %30 = vector.broadcast %29 : vector<8x1xf32> to vector<8x128xf32>
    %31 = arith.divf %27, %30 : vector<8x128xf32>
    %c0_19 = arith.constant 0 : index
    %c0_20 = arith.constant 0 : index
    %32 = vector.load %arg8[%c0_19, %c0_20] : memref<8x128xf32, #tpu.memory_space<vmem>>, vector<8x128xf32>
    tpu.vector_store %arg8[%c0_19, %c0_20], %31 {strides = array<i32>} : memref<8x128xf32, #tpu.memory_space<vmem>>, vector<8x128xf32>,
    return
  }
  func.func @transform_0(%arg0: i32) -> (i32, i32) {
    %c0_i32 = arith.constant 0 : i32
    %c0_i32_0 = arith.constant 0 : i32
    return %arg0, %c0_i32 : i32, i32
  }
  func.func @transform_1(%arg0: i32) -> (i32, i32) {
    %c0_i32 = arith.constant 0 : i32
    %c0_i32_0 = arith.constant 0 : i32
    %c0_i32_1 = arith.constant 0 : i32
    return %c0_i32, %c0_i32_0 : i32, i32
  }
  func.func @transform_2(%arg0: i32) -> (i32, i32) {
    %c0_i32 = arith.constant 0 : i32
    %c0_i32_0 = arith.constant 0 : i32
    %c0_i32_1 = arith.constant 0 : i32
    return %c0_i32, %c0_i32_0 : i32, i32
  }
  func.func @transform_3(%arg0: i32) -> (i32, i32) {
    %c0_i32 = arith.constant 0 : i32
    %c0_i32_0 = arith.constant 0 : i32
    %c0_i32_1 = arith.constant 0 : i32
    return %c0_i32, %c0_i32_0 : i32, i32
  }
  func.func @transform_4(%arg0: i32) -> (i32, i32) {
    %c0_i32 = arith.constant 0 : i32
    %c0_i32_0 = arith.constant 0 : i32
    %c0_i32_1 = arith.constant 0 : i32
    return %c0_i32, %c0_i32_0 : i32, i32
  }
  func.func @transform_5(%arg0: i32) -> (i32, i32) {
    %c0_i32 = arith.constant 0 : i32
    %c0_i32_0 = arith.constant 0 : i32
    %c0_i32_1 = arith.constant 0 : i32
    return %c0_i32, %c0_i32_0 : i32, i32
  }
  func.func @transform_6(%arg0: i32) -> (i32, i32) {
    %c0_i32 = arith.constant 0 : i32
    %c0_i32_0 = arith.constant 0 : i32
    %c0_i32_1 = arith.constant 0 : i32
    return %c0_i32, %c0_i32_0 : i32, i32
  }
  func.func @transform_7(%arg0: i32) -> (i32, i32) {
    %c0_i32 = arith.constant 0 : i32
    %c0_i32_0 = arith.constant 0 : i32
    return %arg0, %c0_i32 : i32, i32
  }
}

</mosaic_0001>

<bundles_post_ra>
// kernel: tpu_custom_call.1
= control target key start
LH: loop header
LB: loop body
LE: loop exit
PB: predicated region body
PF: predicated region fallthrough
CT: control target
= control target key end

     0   :  { %12 = vsyncpa [#allocation3], 0  ;;  %s953_s0 = inlined_call_operand.hbm [shape: f32[8,128], index: 0, kind: input, shape index: {}]   ;;  %s954_s1 = inlined_call_operand.hbm [shape: bf16[128,128], index: 1, kind: input, shape index: {}]   ;;  %s955_s2 = inlined_call_operand.vmem [shape: f32[1,128], index: 2, kind: input, shape index: {}]   ;;  %s956_s3 = inlined_call_operand.hbm [shape: bf16[128,256], index: 3, kind: input, shape index: {}]   ;;  %s957_s4 = inlined_call_operand.vmem [shape: f32[1,256], index: 4, kind: input, shape index: {}]   ;;  %s958_s5 = inlined_call_operand.hbm [shape: bf16[256,128], index: 5, kind: input, shape index: {}]   ;;  %s959_s6 = inlined_call_operand.vmem [shape: f32[1,128], index: 6, kind: input, shape index: {}]   ;;  %s960_s7 = inlined_call_operand.hbm [shape: f32[8,128], index: 7, kind: output, shape index: {}]  }
   0x1   :  { %13 = vsyncpa [#allocation6], 0 }
   0x2   :  { %14 = vsyncpa [#allocation9], 0 }
   0x3   :  { %15 = vsyncpa [#allocation4], 0  ;;  %s826_s24 = smov [#allocation5]   ;;  %s708_s28 = scalar_lea.hbm %s954_s1, 1024 }
   0x4   :  { %s31_s25 = sshll.u32 %s826_s24, 4  ;;  %p709_p0 = scmp.ne.s32.totalorder %s954_s1, %s708_s28  ;;  %s32_s25 = int_to_ptr.vmem [resolvable:$true] %s31_s25 }
   0x5   :  { %p712_p1 = scmp.lt.u32.totalorder %s708_s28, %s954_s1 }
   0x7   :  { %p714_p2 = pnand %p712_p1, %p709_p0 }
   0x9   :  { %717 = shalt.err (!%p714_p2)
}
   0xa   :  { %s718_s10 = scalar_lea.vmem %s32_s25, 1024  ;;  %p723_p4 = scmp.lt.s32.totalorder %s32_s25, %s32_s25 }
   0xb   :  { %p719_p3 = scmp.ne.s32.totalorder %s32_s25, %s718_s10  ;;  %p724_p5 = scmp.lt.s32.totalorder %s718_s10, %s718_s10 }
   0xd   :  { %p725_p6 = por %p724_p5, %p723_p4 }
   0xf   :  { %p726_p7 = pnand %p725_p6, %p719_p3 }
  0x11   :  { %729 = shalt.err (!%p726_p7)
}
  0x12   :  { %s827_s11 = smov 64   ;;  %s828_s12 = smov 4  }
  0x13   :  { %37 = dma.hbm_to_vmem [thread:$0]  %s954_s1, 1024, %s32_s25, [#allocation6], %s827_s11, %s827_s11, %s828_s12  }
  0x14   :  { %s829_s15 = smov [#allocation2]   ;;  %s830_s17 = smov [#allocation7]  }
  0x15   :  { %s22_s16 = sshll.u32 %s829_s15, 4  ;;  %s45_s18 = sshll.u32 %s830_s17, 4  ;;  %s23_s16 = int_to_ptr.vmem [resolvable:$true] %s22_s16  ;;  %s46_s18 = int_to_ptr.vmem [resolvable:$true] %s45_s18 }
  0x16   :  { %s730_s21 = scalar_lea.hbm %s953_s0, 128 }
  0x17   :  { %p731_p8 = scmp.ne.s32.totalorder %s953_s0, %s730_s21  ;;  %p734_p9 = scmp.lt.u32.totalorder %s730_s21, %s953_s0 }
  0x19   :  { %p736_p10 = pnand %p734_p9, %p731_p8 }
  0x1b   :  { %739 = shalt.err (!%p736_p10)
}
  0x1c   :  { %s740_s1 = scalar_lea.vmem %s23_s16, 128  ;;  %p745_p12 = scmp.lt.s32.totalorder %s23_s16, %s23_s16 }
  0x1d   :  { %p741_p11 = scmp.ne.s32.totalorder %s23_s16, %s740_s1  ;;  %p746_p13 = scmp.lt.s32.totalorder %s740_s1, %s740_s1 }
  0x1f   :  { %p747_p0 = por %p746_p13, %p745_p12 }
  0x21   :  { %p748_p1 = pnand %p747_p0, %p741_p11 }
  0x23   :  { %751 = shalt.err (!%p748_p1)
}
  0x24   :  { %25 = dma.hbm_to_vmem [thread:$0]  %s953_s0, 128, %s23_s16, [#allocation3]  }
  0x25   :  { %s752_s30 = scalar_lea.hbm %s956_s3, 2048 }
  0x26   :  { %p753_p2 = scmp.ne.s32.totalorder %s956_s3, %s752_s30  ;;  %p756_p3 = scmp.lt.u32.totalorder %s752_s30, %s956_s3 }
  0x28   :  { %p758_p4 = pnand %p756_p3, %p753_p2 }
  0x2a   :  { %761 = shalt.err (!%p758_p4)
}
  0x2b   :  { %s762_s14 = scalar_lea.vmem %s46_s18, 2048  ;;  %p767_p6 = scmp.lt.s32.totalorder %s46_s18, %s46_s18 }
  0x2c   :  { %p763_p5 = scmp.ne.s32.totalorder %s46_s18, %s762_s14  ;;  %p768_p7 = scmp.lt.s32.totalorder %s762_s14, %s762_s14 }
  0x2e   :  { %p769_p8 = por %p768_p7, %p767_p6 }
  0x30   :  { %p770_p9 = pnand %p769_p8, %p763_p5 }
  0x32   :  { %773 = shalt.err (!%p770_p9)
}
  0x33   :  { %s831_s0 = smov 128   ;;  %s832_s15 = smov 8  }
  0x34   :  { %51 = dma.hbm_to_vmem [thread:$0]  %s956_s3, 2048, %s46_s18, [#allocation6], %s831_s0, %s831_s0, %s832_s15  }
  0x35   :  { %s833_s19 = smov [#allocation8]   ;;  %s774_s23 = scalar_lea.hbm %s958_s5, 2048 }
  0x36   :  { %s59_s20 = sshll.u32 %s833_s19, 4  ;;  %p775_p10 = scmp.ne.s32.totalorder %s958_s5, %s774_s23  ;;  %s60_s20 = int_to_ptr.vmem [resolvable:$true] %s59_s20 }
  0x37   :  { %p778_p11 = scmp.lt.u32.totalorder %s774_s23, %s958_s5 }
  0x39   :  { %p780_p12 = pnand %p778_p11, %p775_p10 }
  0x3b   :  { %783 = shalt.err (!%p780_p12)
}
  0x3c   :  { %s784_s27 = scalar_lea.vmem %s60_s20, 2048  ;;  %p789_p0 = scmp.lt.s32.totalorder %s60_s20, %s60_s20 }
  0x3d   :  { %p785_p13 = scmp.ne.s32.totalorder %s60_s20, %s784_s27  ;;  %p790_p1 = scmp.lt.s32.totalorder %s784_s27, %s784_s27 }
  0x3f   :  { %p791_p2 = por %p790_p1, %p789_p0 }
  0x41   :  { %p792_p3 = pnand %p791_p2, %p785_p13 }
  0x43   :  { %795 = shalt.err (!%p792_p3)
}
  0x44   :  { %65 = dma.hbm_to_vmem [thread:$0]  %s958_s5, 2048, %s60_s20, [#allocation9], %s827_s11, %s827_s11, %s828_s12  }
  0x45   :  { %818 = dma.done.wait [#allocation3], 128  }
  0x46   :  { %819 = vsyncadd [#allocation3], 4294967168 }
  0x47   :  { %820 = dma.done.wait [#allocation6], 3072  }
  0x48   :  { %821 = vsyncadd [#allocation6], 4294964224 }
  0x49   :  { %822 = dma.done.wait [#allocation9], 2048  }
  0x4a   :  { %823 = vsyncadd [#allocation9], 4294965248  ;;  %v834_v0 = vmov 0.0   ;;  %vm835_vm0 = vmmov 0   ;;  %v656_v1 = vld [vmem:[#allocation5] sm:$0xff]   ;;  %v657_v2 = vld [vmem:[#allocation5 + $0x8] sm:$0xff]   ;;  %v214_v52 = vlaneseq }
  0x4b   :  { %624 = vmatprep.subr.bf16.mxu0 %v834_v0  ;;  %640 = vmatprep.mubr.msk.bf16.mxu0 %vm835_vm0, %v834_v0  ;;  %v658_v3 = vld [vmem:[#allocation5 + $0x10] sm:$0xff]   ;;  %v664_v4 = vld [vmem:[#allocation7 + $0x4] ss:$8 sps:$4 sm:$0xff]   ;;  %v666_v5 = vld [vmem:[#allocation7] ss:$8 sps:$4 sm:$0xff]   ;;  %v836_v27 = vmov 0  }
  0x4c   :  { %625 = vmatpush3.bf16.msra.mxu0 %v656_v1  ;;  %v659_v6 = vld [vmem:[#allocation5 + $0x18] sm:$0xff]   ;;  %304 = vmatprep.subr.bf16.mxu1 %v664_v4  ;;  %v670_v9 = vld [vmem:[#allocation7 + $0x24] ss:$8 sps:$4 sm:$0xff]   ;;  %v672_v11 = vld [vmem:[#allocation7 + $0x20] ss:$8 sps:$4 sm:$0xff]   ;;  %v215_v53 = vshrl.u32 %v214_v52, 7 }
  0x4d   :  { %626 = vmatprep.subr.bf16.mxu0 %v834_v0  ;;  %v667_v7 = vld [vmem:[#allocation7 + $0x14] ss:$8 sps:$4 sm:$0xff]   ;;  %305 = vmatpush1.bf16.msra.mxu1 %v666_v5  ;;  %v669_v8 = vld [vmem:[#allocation7 + $0x10] ss:$8 sps:$4 sm:$0xff]   ;;  %v660_v10 = vld [vmem:[#allocation5 + $0x20] sm:$0xff]  }
  0x4e   :  { %306 = vmatprep.subr.bf16.mxu1 %v667_v7  ;;  %v661_v12 = vld [vmem:[#allocation5 + $0x28] sm:$0xff]   ;;  %v673_v13 = vld [vmem:[#allocation7 + $0x34] ss:$8 sps:$4 sm:$0xff]   ;;  %v675_v14 = vld [vmem:[#allocation7 + $0x30] ss:$8 sps:$4 sm:$0xff]   ;;  %336 = vmatprep.mubr.bf16.mxu1 %v836_v27  ;;  %v216_v54 = vsub.s32 0, %v215_v53 }
  0x4f   :  { %v676_v15 = vld [vmem:[#allocation7 + $0x44] ss:$8 sps:$4 sm:$0xff]   ;;  %v662_v16 = vld [vmem:[#allocation5 + $0x30] sm:$0xff]   ;;  %v678_v17 = vld [vmem:[#allocation7 + $0x40] ss:$8 sps:$4 sm:$0xff]   ;;  %v220_v56 = vsub.s32 1, %v215_v53 }
  0x50   :  { %627 = vmatpush3.bf16.msra.mxu0 %v657_v2  ;;  %v679_v18 = vld [vmem:[#allocation7 + $0x54] ss:$8 sps:$4 sm:$0xff]   ;;  %v681_v21 = vld [vmem:[#allocation7 + $0x50] ss:$8 sps:$4 sm:$0xff]   ;;  %v682_v23 = vld [vmem:[#allocation7 + $0x64] ss:$8 sps:$4 sm:$0xff]  }
  0x51   :  { %628 = vmatprep.subr.bf16.mxu0 %v834_v0  ;;  %307 = vmatpush1.bf16.msra.mxu1 %v669_v8  ;;  %v663_v19 = vld [vmem:[#allocation5 + $0x38] sm:$0xff]   ;;  %v684_v24 = vld [vmem:[#allocation7 + $0x60] ss:$8 sps:$4 sm:$0xff]   ;;  %v692_v32 = vld [vmem:[#allocation8 + $0x50] sm:$0xff]  }
  0x52   :  { %308 = vmatprep.subr.bf16.mxu1 %v670_v9  ;;  %v81_v20 = vld [vmem:[#allocation2] sm:$0xff]  ;;  %v688_v28 = vld [vmem:[#allocation8 + $0x40] sm:$0xff]   ;;  %v690_v30 = vld [vmem:[#allocation8 + $0x48] sm:$0xff]  }
  0x53   :  { %v82_v22 = vpack.c.bf16 %v81_v20, %v81_v20  ;;  %v685_v25 = vld [vmem:[#allocation7 + $0x74] ss:$8 sps:$4 sm:$0xff]   ;;  %v687_v26 = vld [vmem:[#allocation7 + $0x70] ss:$8 sps:$4 sm:$0xff]   ;;  %v689_v29 = vld [vmem:[#allocation8] sm:$0xff]  }
  0x54   :  { %629 = vmatpush3.bf16.msra.mxu0 %v658_v3  ;;  %v691_v31 = vld [vmem:[#allocation8 + $0x8] sm:$0xff]   ;;  %v693_v33 = vld [vmem:[#allocation8 + $0x10] sm:$0xff]   ;;  %v694_v34 = vld [vmem:[#allocation8 + $0x58] sm:$0xff]  }
  0x55   :  { %630 = vmatprep.subr.bf16.mxu0 %v834_v0  ;;  %309 = vmatpush1.bf16.msra.mxu1 %v672_v11  ;;  %v695_v35 = vld [vmem:[#allocation8 + $0x18] sm:$0xff]   ;;  %v696_v36 = vld [vmem:[#allocation8 + $0x60] sm:$0xff]   ;;  %v698_v38 = vld [vmem:[#allocation8 + $0x68] sm:$0xff]  }
  0x56   :  { %310 = vmatprep.subr.bf16.mxu1 %v673_v13  ;;  %v697_v37 = vld [vmem:[#allocation8 + $0x20] sm:$0xff]   ;;  %v699_v39 = vld [vmem:[#allocation8 + $0x28] sm:$0xff]   ;;  %v551_v40 = vld [vmem:[%s955_s2] ss:$0 sm:$0xff] }
  0x57   :  { %v700_v48 = vld [vmem:[#allocation8 + $0x70] sm:$0xff]   ;;  %v702_v50 = vld [vmem:[#allocation8 + $0x78] sm:$0xff]  }
  0x58   :  { %631 = vmatpush3.bf16.msra.mxu0 %v659_v6  ;;  %v701_v49 = vld [vmem:[#allocation8 + $0x30] sm:$0xff]   ;;  %v703_v51 = vld [vmem:[#allocation8 + $0x38] sm:$0xff]  }
  0x59   :  { %632 = vmatprep.subr.bf16.mxu0 %v834_v0  ;;  %311 = vmatpush1.bf16.msra.mxu1 %v675_v14  ;;  %v212_v55 = vld [vmem:[%s957_s4] sm:$0x3]  ;;  %s837_s4 = smov [#allocation10]  }
  0x5a   :  { %312 = vmatprep.subr.bf16.mxu1 %v676_v15  ;;  %v217_v57 = vrot.slane %v212_v55, %v216_v54  ;;  %v221_v58 = vrot.slane %v212_v55, %v220_v56  ;;  %v576_v7 = vld [vmem:[%s959_s6] ss:$0 sm:$0xff]  ;;  %s540_s30 = sshll.u32 %s837_s4, 4  ;;  %s541_s30 = int_to_ptr.vmem [resolvable:$true] %s540_s30 }
  0x5b   :  { %s796_s6 = scalar_lea.vmem %s541_s30, 128  ;;  %p801_p5 = scmp.lt.s32.totalorder %s541_s30, %s541_s30 }
  0x5c   :  { %633 = vmatpush3.bf16.msra.mxu0 %v660_v10  ;;  %p797_p4 = scmp.ne.s32.totalorder %s541_s30, %s796_s6  ;;  %p802_p6 = scmp.lt.s32.totalorder %s796_s6, %s796_s6 }
  0x5d   :  { %634 = vmatprep.subr.bf16.mxu0 %v834_v0  ;;  %313 = vmatpush1.bf16.msra.mxu1 %v678_v17 }
  0x5e   :  { %314 = vmatprep.subr.bf16.mxu1 %v679_v18  ;;  %p803_p7 = por %p802_p6, %p801_p5 }
  0x60   :  { %635 = vmatpush3.bf16.msra.mxu0 %v661_v12  ;;  %p804_p8 = pnand %p803_p7, %p797_p4 }
  0x61   :  { %636 = vmatprep.subr.bf16.mxu0 %v834_v0  ;;  %315 = vmatpush1.bf16.msra.mxu1 %v681_v21 }
  0x62   :  { %316 = vmatprep.subr.bf16.mxu1 %v682_v23 }
  0x64   :  { %637 = vmatpush3.bf16.msra.mxu0 %v662_v16 }
  0x65   :  { %638 = vmatprep.subr.bf16.mxu0 %v834_v0  ;;  %317 = vmatpush1.bf16.msra.mxu1 %v684_v24 }
  0x66   :  { %318 = vmatprep.subr.bf16.mxu1 %v685_v25 }
  0x68   :  { %639 = vmatpush3.bf16.msra.mxu0 %v663_v19 }
  0x69   :  { %319 = vmatpush1.bf16.msra.mxu1 %v687_v26  ;;  %602 = vmatprep.subr.bf16.mxu0 %v688_v28 }
  0x6b   :  { %641 = vmatmul.mubr.bf16.vlgmr.msra.gmra.mrb[0].mxu0 %v82_v22 }
  0x6c   :  { %603 = vmatpush3.bf16.msra.mxu0 %v689_v29 }
  0x6d   :  { %604 = vmatprep.subr.bf16.mxu0 %v690_v30 }
  0x70   :  { %605 = vmatpush3.bf16.msra.mxu0 %v691_v31 }
  0x71   :  { %606 = vmatprep.subr.bf16.mxu0 %v692_v32 }
  0x74   :  { %607 = vmatpush3.bf16.msra.mxu0 %v693_v33 }
  0x75   :  { %608 = vmatprep.subr.bf16.mxu0 %v694_v34 }
  0x78   :  { %609 = vmatpush3.bf16.msra.mxu0 %v695_v35 }
  0x79   :  { %610 = vmatprep.subr.bf16.mxu0 %v696_v36 }
  0x7c   :  { %611 = vmatpush3.bf16.msra.mxu0 %v697_v37 }
  0x7d   :  { %612 = vmatprep.subr.bf16.mxu0 %v698_v38 }
  0x80   :  { %613 = vmatpush3.bf16.msra.mxu0 %v699_v39 }
  0x81   :  { %614 = vmatprep.subr.bf16.mxu0 %v700_v48 }
  0x84   :  { %615 = vmatpush3.bf16.msra.mxu0 %v701_v49 }
  0x85   :  { %616 = vmatprep.subr.bf16.mxu0 %v702_v50 }
  0x88   :  { %617 = vmatpush3.bf16.msra.mxu0 %v703_v51 }
 0x13e   :  { %v188_v41 = vpop.f32.mrb[0].mxu0 }
 0x13f   :  { %v189_v42 = vadd.f32 %v551_v40, %v188_v41  ;;  %v642_v43 = vpop.f32.mrb[1].mxu0 }
 0x140   :  { %v191_v44 = vpop.f32.mrb[2].mxu0 }
 0x141   :  { %v194_v45 = vmax.f32 %v189_v42, 0.0  ;;  %v643_v46 = vpop.f32.mrb[3].mxu0 }
 0x143   :  { %v195_v47 = vpack.c.bf16 %v194_v45, %v194_v45 }
 0x145   :  { %337 = vmatmul.mubr.bf16.vlgmr.msra.gmra.mrb[0].mxu1 %v195_v47 }
 0x218   :  { %v338_v59 = vpop.f32.mrb[0].mxu1 }
 0x219   :  { %v339_v60 = vadd.f32 %v338_v59, %v217_v57  ;;  %v340_v61 = vpop.f32.mrb[1].mxu1 }
 0x21a   :  { %v341_v62 = vadd.f32 %v340_v61, %v221_v58  ;;  %v342_v63 = vpop.f32.mrb[2].mxu1 }
 0x21b   :  { %v345_v0 = vmax.f32 %v339_v60, 0.0  ;;  %v343_v1 = vpop.f32.mrb[3].mxu1 }
 0x21c   :  { %v346_v2 = vmax.f32 %v341_v62, 0.0 }
 0x21d   :  { %v347_v4 = vpack.c.bf16 %v345_v0, %v345_v0 }
 0x21e   :  { %v348_v3 = vpack.c.bf16 %v346_v2, %v346_v2 }
 0x220   :  { %516 = vmatprep.mubr.bf16.mxu0 %v348_v3 }
 0x221   :  { %517 = vmatmul.mubr.bf16.vlgmr.msra.gmra.mrb[4].mxu0 %v347_v4 }
 0x2f4   :  { %v618_v5 = vpop.f32.mrb[4].mxu0 }
 0x2f5   :  { %v619_v6 = vpop.f32.mrb[5].mxu0 }
 0x2f6   :  { %v620_v8 = vadd.f32 %v619_v6, %v618_v5  ;;  %v621_v9 = vpop.f32.mrb[6].mxu0 }
 0x2f7   :  { %v622_v10 = vpop.f32.mrb[7].mxu0 }
 0x2f8   :  { %v519_v11 = vadd.f32 %v620_v8, %v576_v7 }
 0x2fa   :  { %524 = vmax.xlane.f32.xlu0 %v519_v11 }
 0x387   :  { %v525_v12 = vpop.xlane.xlu0 %524 }
 0x388   :  { %v526_v13 = vsub.f32 %v519_v11, %v525_v12 }
 0x38a   :  { %v527_v14 = vmul.f32 1.442695, %v526_v13 }
 0x38c   :  { %704 = vpow2.f32 %v527_v14 }
 0x396   :  { %v705_v15 = vpop.eup %704 }
 0x397   :  { %529 = vadd.xlane.f32.xlu0 %v705_v15 }
 0x424   :  { %v530_v16 = vpop.xlane.xlu0 %529 }
 0x425   :  { %706 = vrcp.f32 %v530_v16 }
 0x42f   :  { %v707_v17 = vpop.eup %706 }
 0x430   :  { %v532_v18 = vmul.f32 %v707_v17, %v705_v15 }
 0x432   :  { %533 = vst [vmem:[#allocation10] sm:$0xff] %v532_v18 }
 0x433   :  { %807 = shalt.err (!%p804_p8)
}
 0x434   :  { %s808_s10 = scalar_lea.hbm %s960_s7, 128 }
 0x435   :  { %p809_p9 = scmp.ne.s32.totalorder %s960_s7, %s808_s10  ;;  %p812_p10 = scmp.lt.u32.totalorder %s808_s10, %s960_s7 }
 0x437   :  { %p814_p11 = pnand %p812_p10, %p809_p9 }
 0x439   :  { %817 = shalt.err (!%p814_p11)
}
 0x43a   :  { %543 = dma.vmem_to_hbm [thread:$0]  %s541_s30, 128, %s960_s7, [#allocation4]  }
 0x43b   :  { %824 = dma.done.wait [#allocation4], 128  }
 0x43c   :  { %825 = vsyncadd [#allocation4], 4294967168 }
 0x43d   :  { %547 = vsyncpa [#allocation3], 1 }
 0x43e   :  { %548 = vsyncpa [#allocation6], 1 }
 0x43f   :  { %549 = vsyncpa [#allocation9], 1 }
 0x440   :  { %550 = vsyncpa [#allocation4], 1 }

</bundles_post_ra>
